<compile_context>
chip_gen: v6e
topology: v6e:2x2x1
jax: 0.10.0
libtpu: 0.0.40
codegen_flags: <defaults>
</compile_context>

<pallas_src>
import functools

import jax
import jax.numpy as jnp
from jax.experimental import pallas as pl
from jax.experimental.pallas import tpu as pltpu


def _cwd_kl_kernel(s_ref, t_ref, out_ref, *, inv_temperature, rows):
    """One grid step: a (tm, HW) tile of student / teacher rows.

    Writes this tile's contribution to
        sum_{rows,cols} softmax(t) * (log_softmax(t) - log_softmax(s))
    (nn.KLDivLoss(reduction='sum') with log-softmax'd student input)
    into its own (1,1,1) output block.
    """
    tm = s_ref.shape[0]

    # --- Student branch: fully reduce first so its full-size temporaries die.
    s = s_ref[...].astype(jnp.float32) * inv_temperature
    s_max = jnp.max(s, axis=-1, keepdims=True)                            # (tm, 1)
    s_lse = jnp.log(jnp.sum(jnp.exp(s - s_max), axis=-1, keepdims=True))  # (tm, 1)

    # --- Teacher branch.
    t = t_ref[...].astype(jnp.float32) * inv_temperature
    t_max = jnp.max(t, axis=-1, keepdims=True)                            # (tm, 1)
    t_shift = t - t_max                                                   # t dies
    # diff = t_shift - s_shift; computing it here lets `s` die before t_exp.
    diff = t_shift - (s - s_max)                                          # s dies

    t_exp = jnp.exp(t_shift)                                              # t_shift dies
    t_sum = jnp.sum(t_exp, axis=-1, keepdims=True)                        # (tm, 1)
    t_log_sum = jnp.log(t_sum)                                            # (tm, 1)

    # KL_row = (1/t_sum) * sum_j t_exp_j * diff_j + (s_lse - log t_sum)
    cross = jnp.sum(t_exp * diff, axis=-1, keepdims=True)                 # (tm, 1)
    row_kl = cross / t_sum + (s_lse - t_log_sum)                          # (tm, 1)

    if rows % tm != 0:
        # Last tile has garbage rows past `rows`; zero their contribution.
        # jnp.where is a select, so Inf/NaN garbage in those rows is harmless.
        i = pl.program_id(0)
        row_idx = jax.lax.broadcasted_iota(jnp.int32, (tm, 1), 0) + i * tm
        row_kl = jnp.where(row_idx < rows, row_kl, 0.0)

    out_ref[...] = jnp.sum(row_kl, axis=0, keepdims=True).reshape(1, 1, 1)


def _hw_vmem_capacity_bytes():
    """Physical VMEM capacity; conservative fallback if the query fails."""
    try:
        return int(pltpu.get_tpu_info().vmem_capacity_bytes)
    except Exception:
        return 64 * 1024 * 1024  # assume the smallest (v7x per-TC) if unknown


def _choose_config(rows, hw):
    """Pick (tm, vmem_limit_bytes) from the hardware generation.

    Budget model (f32): 2 inputs x 2 pipeline buffers + ~3 full-size live
    temporaries ~= 7 x tile_bytes, which must stay under the vmem limit.
    """
    vmem = _hw_vmem_capacity_bytes()
    if vmem >= 100 * 1024 * 1024:
        # v5e / v6e: 128 MiB physical VMEM -> big tiles are free.
        target_tile_bytes = 6 * 1024 * 1024
        vmem_limit_bytes = 96 * 1024 * 1024
    else:
        # v7x: 64 MiB physical VMEM per TC -> leave headroom.
        target_tile_bytes = 5 * 1024 * 1024
        vmem_limit_bytes = 54 * 1024 * 1024

    tm = target_tile_bytes // (hw * 4)
    tm = max(8, (tm // 8) * 8)
    rows_rounded = ((rows + 7) // 8) * 8
    tm = min(tm, rows_rounded)
    return tm, vmem_limit_bytes


def criterion_cwd(preds_S, preds_T, *, temperature=4.0, loss_weight=3.0):
    """Forward pass of CriterionCWD(norm_type='channel', divergence='kl')."""
    n, c, h, w = preds_S.shape
    hw = h * w
    rows = n * c

    # NCHW -> (N*C, H*W): a pure view on contiguous data, no HBM copy.
    # If the surrounding model runs in bf16, pass bf16 slabs; the kernel
    # upcasts to f32 before exp (required on v5e: no bf16 EUP/VPU path).
    s2d = preds_S.reshape(rows, hw)
    t2d = preds_T.reshape(rows, hw)   # teacher is .detach() in torch; fwd only here

    tm, vmem_limit_bytes = _choose_config(rows, hw)
    num_tiles = pl.cdiv(rows, tm)

    kernel = functools.partial(
        _cwd_kl_kernel, inv_temperature=1.0 / temperature, rows=rows)

    partials = pl.pallas_call(
        kernel,
        out_shape=jax.ShapeDtypeStruct((num_tiles, 1, 1), jnp.float32),
        grid_spec=pltpu.PrefetchScalarGridSpec(
            num_scalar_prefetch=0,
            grid=(num_tiles,),
            in_specs=[
                pl.BlockSpec((tm, hw), lambda i: (i, 0)),
                pl.BlockSpec((tm, hw), lambda i: (i, 0)),
            ],
            out_specs=pl.BlockSpec((1, 1, 1), lambda i: (i, 0, 0)),
        ),
        compiler_params=pltpu.CompilerParams(
            # Each grid step writes a distinct output block -> safe to shard
            # across TensorCores (helps v7x; neutral on single-TC v5e/v6e).
            dimension_semantics=("parallel",),
            vmem_limit_bytes=vmem_limit_bytes,
        ),
    )(s2d, t2d)

    kl_sum = jnp.sum(partials)

    # norm_type == 'channel' -> divide by n*c, then scale by T^2 * loss_weight.
    loss = kl_sum / (n * c)
    return loss * (temperature ** 2) * loss_weight


def _reference(preds_S, preds_T, temperature=4.0, loss_weight=3.0):
    """Pure-JAX reference mirroring the PyTorch module."""
    n, c, h, w = preds_S.shape
    s = (preds_S / temperature).reshape(n, c, -1)
    t = (preds_T / temperature).reshape(n, c, -1)
    log_p_s = jax.nn.log_softmax(s, axis=-1)
    p_t = jax.nn.softmax(t, axis=-1)
    log_p_t = jax.nn.log_softmax(t, axis=-1)
    kl = jnp.sum(p_t * (log_p_t - log_p_s))
    return kl / (n * c) * (temperature ** 2) * loss_weight


if __name__ == "__main__":
    key = jax.random.PRNGKey(0)
    k1, k2 = jax.random.split(key)
    n, c, h, w = 2, 4, 16, 16
    preds_S = jax.random.normal(k1, (n, c, h, w), dtype=jnp.float32)
    preds_T = jax.random.normal(k2, (n, c, h, w), dtype=jnp.float32)

    out = criterion_cwd(preds_S, preds_T)
    out = jax.block_until_ready(out)

    ref = _reference(preds_S, preds_T)
    assert jnp.allclose(out, ref, rtol=1e-4, atol=1e-4), (out, ref)

    print("KERNEL_OK")
</pallas_src>

<mosaic_0001>
module attributes {stable_mosaic.version = 11 : i64} {
  func.func @_cwd_kl_kernel(%arg0: i32, %arg1: memref<8x256xf32, #tpu.memory_space<vmem>>, %arg2: memref<8x256xf32, #tpu.memory_space<vmem>>, %arg3: memref<1x1x1xf32, #tpu.memory_space<vmem>>) attributes {dimension_semantics = [#tpu.dimension_semantics<parallel>], iteration_bounds = array<i64: 1>, scalar_prefetch = 0 : i64, scratch_operands = 0 : i64, tpu.core_type = #tpu.core_type<tc>, window_params = [{transform_indices = @transform_0, window_bounds = array<i64: 8, 256>}, {transform_indices = @transform_1, window_bounds = array<i64: 8, 256>}, {transform_indices = @transform_2, window_bounds = array<i64: 1, 1, 1>}]} {
    %c0 = arith.constant 0 : index
    %c0_0 = arith.constant 0 : index
    %0 = vector.load %arg1[%c0, %c0_0] : memref<8x256xf32, #tpu.memory_space<vmem>>, vector<8x256xf32>
    %cst = arith.constant 2.500000e-01 : f32
    %1 = vector.broadcast %cst : f32 to vector<8x256xf32>
    %2 = arith.mulf %0, %1 : vector<8x256xf32>
    %cst_1 = arith.constant dense<0xFF800000> : vector<8xf32>
    %3 = vector.multi_reduction <maximumf>, %2, %cst_1 [1] : vector<8x256xf32> to vector<8xf32>
    %4 = vector.shape_cast %3 : vector<8xf32> to vector<8x1xf32>
    %5 = vector.broadcast %4 : vector<8x1xf32> to vector<8x256xf32>
    %6 = arith.subf %2, %5 : vector<8x256xf32>
    %7 = math.exp %6 : vector<8x256xf32>
    %cst_2 = arith.constant dense<0.000000e+00> : vector<8xf32>
    %8 = vector.multi_reduction <add>, %7, %cst_2 [1] : vector<8x256xf32> to vector<8xf32>
    %9 = vector.shape_cast %8 : vector<8xf32> to vector<8x1xf32>
    %10 = math.log %9 : vector<8x1xf32>
    %c0_3 = arith.constant 0 : index
    %c0_4 = arith.constant 0 : index
    %11 = vector.load %arg2[%c0_3, %c0_4] : memref<8x256xf32, #tpu.memory_space<vmem>>, vector<8x256xf32>
    %cst_5 = arith.constant 2.500000e-01 : f32
    %12 = vector.broadcast %cst_5 : f32 to vector<8x256xf32>
    %13 = arith.mulf %11, %12 : vector<8x256xf32>
    %cst_6 = arith.constant dense<0xFF800000> : vector<8xf32>
    %14 = vector.multi_reduction <maximumf>, %13, %cst_6 [1] : vector<8x256xf32> to vector<8xf32>
    %15 = vector.shape_cast %14 : vector<8xf32> to vector<8x1xf32>
    %16 = vector.broadcast %15 : vector<8x1xf32> to vector<8x256xf32>
    %17 = arith.subf %13, %16 : vector<8x256xf32>
    %18 = vector.broadcast %4 : vector<8x1xf32> to vector<8x256xf32>
    %19 = arith.subf %2, %18 : vector<8x256xf32>
    %20 = arith.subf %17, %19 : vector<8x256xf32>
    %21 = math.exp %17 : vector<8x256xf32>
    %cst_7 = arith.constant dense<0.000000e+00> : vector<8xf32>
    %22 = vector.multi_reduction <add>, %21, %cst_7 [1] : vector<8x256xf32> to vector<8xf32>
    %23 = vector.shape_cast %22 : vector<8xf32> to vector<8x1xf32>
    %24 = math.log %23 : vector<8x1xf32>
    %25 = arith.mulf %21, %20 : vector<8x256xf32>
    %cst_8 = arith.constant dense<0.000000e+00> : vector<8xf32>
    %26 = vector.multi_reduction <add>, %25, %cst_8 [1] : vector<8x256xf32> to vector<8xf32>
    %27 = vector.shape_cast %26 : vector<8xf32> to vector<8x1xf32>
    %28 = arith.divf %27, %23 : vector<8x1xf32>
    %29 = arith.subf %10, %24 : vector<8x1xf32>
    %30 = arith.addf %28, %29 : vector<8x1xf32>
    %cst_9 = arith.constant dense<0.000000e+00> : vector<1xf32>
    %31 = vector.multi_reduction <add>, %30, %cst_9 [0] : vector<8x1xf32> to vector<1xf32>
    %32 = vector.shape_cast %31 : vector<1xf32> to vector<1x1xf32>
    %33 = vector.shape_cast %32 : vector<1x1xf32> to vector<1x1x1xf32>
    %c0_10 = arith.constant 0 : index
    %c0_11 = arith.constant 0 : index
    %c0_12 = arith.constant 0 : index
    %34 = vector.load %arg3[%c0_10, %c0_11, %c0_12] : memref<1x1x1xf32, #tpu.memory_space<vmem>>, vector<1x1x1xf32>
    tpu.vector_store %arg3[%c0_10, %c0_11, %c0_12], %33 {strides = array<i32>} : memref<1x1x1xf32, #tpu.memory_space<vmem>>, vector<1x1x1xf32>,
    return
  }
  func.func @transform_0(%arg0: i32) -> (i32, i32) {
    %c0_i32 = arith.constant 0 : i32
    %c0_i32_0 = arith.constant 0 : i32
    return %arg0, %c0_i32 : i32, i32
  }
  func.func @transform_1(%arg0: i32) -> (i32, i32) {
    %c0_i32 = arith.constant 0 : i32
    %c0_i32_0 = arith.constant 0 : i32
    return %arg0, %c0_i32 : i32, i32
  }
  func.func @transform_2(%arg0: i32) -> (i32, i32, i32) {
    %c0_i32 = arith.constant 0 : i32
    %c0_i32_0 = arith.constant 0 : i32
    %c0_i32_1 = arith.constant 0 : i32
    return %arg0, %c0_i32, %c0_i32_0 : i32, i32, i32
  }
}

</mosaic_0001>

<bundles_post_ra>
// kernel: tpu_custom_call.1
= control target key start
LH: loop header
LB: loop body
LE: loop exit
PB: predicated region body
PF: predicated region fallthrough
CT: control target
= control target key end

     0   :  { %7 = vsyncpa [#allocation3], 0  ;;  %s217_s0 = inlined_call_operand.hbm [shape: f32[8,256], index: 0, kind: input, shape index: {}]   ;;  %s218_s1 = inlined_call_operand.hbm [shape: f32[8,256], index: 1, kind: input, shape index: {}]   ;;  %s219_s2 = inlined_call_operand.hbm [shape: f32[1,1,1], index: 2, kind: output, shape index: {}]  }
   0x1   :  { %8 = vsyncpa [#allocation6], 0 }
   0x2   :  { %9 = vsyncpa [#allocation4], 0  ;;  %s190_s9 = smov [#allocation2]   ;;  %s191_s11 = smov [#allocation5]  }
   0x3   :  { %s16_s10 = sshll.u32 %s190_s9, 4  ;;  %s26_s12 = sshll.u32 %s191_s11, 4  ;;  %s17_s10 = int_to_ptr.vmem [resolvable:$true] %s16_s10  ;;  %s27_s12 = int_to_ptr.vmem [resolvable:$true] %s26_s12 }
   0x4   :  { %s132_s13 = scalar_lea.vmem %s17_s10, 256  ;;  %p137_p1 = scmp.lt.s32.totalorder %s17_s10, %s17_s10 }
   0x5   :  { %p133_p0 = scmp.ne.s32.totalorder %s17_s10, %s132_s13  ;;  %p138_p2 = scmp.lt.s32.totalorder %s132_s13, %s132_s13 }
   0x7   :  { %p139_p3 = por %p138_p2, %p137_p1 }
   0x9   :  { %p140_p4 = pnand %p139_p3, %p133_p0 }
   0xb   :  { %143 = shalt.err (!%p140_p4)
}
   0xc   :  { %19 = dma.hbm_to_vmem [thread:$0]  %s217_s0, 256, %s17_s10, [#allocation3]  }
   0xd   :  { %s152_s16 = scalar_lea.vmem %s27_s12, 256  ;;  %p157_p6 = scmp.lt.s32.totalorder %s27_s12, %s27_s12 }
   0xe   :  { %p153_p5 = scmp.ne.s32.totalorder %s27_s12, %s152_s16  ;;  %p158_p7 = scmp.lt.s32.totalorder %s152_s16, %s152_s16 }
  0x10   :  { %p159_p8 = por %p158_p7, %p157_p6 }
  0x12   :  { %p160_p9 = pnand %p159_p8, %p153_p5 }
  0x14   :  { %163 = shalt.err (!%p160_p9)
}
  0x15   :  { %29 = dma.hbm_to_vmem [thread:$0]  %s218_s1, 256, %s27_s12, [#allocation6]  }
  0x16   :  { %184 = dma.done.wait [#allocation3], 256  }
  0x17   :  { %185 = vsyncadd [#allocation3], 4294967040 }
  0x18   :  { %186 = dma.done.wait [#allocation6], 256  }
  0x19   :  { %187 = vsyncadd [#allocation6], 4294967040  ;;  %v36_v0 = vld [vmem:[#allocation2] sm:$0xff]  ;;  %v37_v1 = vld [vmem:[#allocation2 + $0x8] sm:$0xff]  ;;  %s192_s0 = smov [#allocation7]   ;;  %vm89_vm0 = vcmask 0  }
  0x1a   :  { %v54_v2 = vld [vmem:[#allocation5] sm:$0xff]  ;;  %v38_v3 = vmul.f32 0.25, %v36_v0  ;;  %v39_v4 = vmul.f32 0.25, %v37_v1  ;;  %v55_v5 = vld [vmem:[#allocation5 + $0x8] sm:$0xff]  ;;  %s97_s1 = sshll.u32 %s192_s0, 4  ;;  %s98_s1 = int_to_ptr.vmem [resolvable:$true] %s97_s1 }
  0x1b   :  { %v56_v6 = vmul.f32 0.25, %v54_v2  ;;  %v57_v7 = vmul.f32 0.25, %v55_v5  ;;  %s164_s19 = scalar_lea.vmem %s98_s1, 16  ;;  %s168_s20 = scalar_lea.vmem %s98_s1, 32 }
  0x1c   :  { %v40_v8 = vmax.f32 %v38_v3, %v39_v4  ;;  %p165_p10 = scmp.ne.s32.totalorder %s98_s1, %s164_s19  ;;  %p169_p11 = scmp.lt.s32.totalorder %s98_s1, %s98_s1 }
  0x1d   :  { %v58_v9 = vmax.f32 %v56_v6, %v57_v7  ;;  %p170_p12 = scmp.lt.s32.totalorder %s168_s20, %s164_s19 }
  0x1e   :  { %41 = vmax.xlane.f32.xlu0 %v40_v8 }
  0x1f   :  { %p171_p13 = por %p170_p12, %p169_p11 }
  0x21   :  { %p172_p0 = pnand %p171_p13, %p165_p10 }
  0x22   :  { %59 = vmax.xlane.f32.xlu0 %v58_v9 }
  0xa7   :  { %v42_v10 = vpop.xlane.xlu0 %41 }
  0xa8   :  { %v43_v11 = vsub.f32 %v38_v3, %v42_v10  ;;  %v44_v12 = vsub.f32 %v39_v4, %v42_v10 }
  0xaa   :  { %v45_v13 = vmul.f32 1.442695, %v43_v11  ;;  %v47_v14 = vmul.f32 1.442695, %v44_v12 }
  0xab   :  { %v60_v15 = vpop.xlane.xlu0 %59 }
  0xac   :  { %110 = vpow2.f32 %v45_v13  ;;  %v61_v16 = vsub.f32 %v56_v6, %v60_v15  ;;  %v62_v17 = vsub.f32 %v57_v7, %v60_v15 }
  0xad   :  { %112 = vpow2.f32 %v47_v14 }
  0xae   :  { %v65_v18 = vmul.f32 1.442695, %v61_v16  ;;  %v67_v19 = vmul.f32 1.442695, %v62_v17  ;;  %v63_v23 = vsub.f32 %v61_v16, %v43_v11  ;;  %v64_v25 = vsub.f32 %v62_v17, %v44_v12 }
  0xb0   :  { %114 = vpow2.f32 %v65_v18 }
  0xb1   :  { %116 = vpow2.f32 %v67_v19 }
  0xb9   :  { %v111_v20 = vpop.eup %110 }
  0xba   :  { %v113_v21 = vpop.eup %112 }
  0xbb   :  { %v49_v22 = vadd.f32 %v113_v21, %v111_v20 }
  0xbd   :  { %v115_v24 = vpop.eup %114  ;;  %50 = vadd.xlane.f32.xlu1 %v49_v22 }
  0xbe   :  { %v117_v26 = vpop.eup %116  ;;  %v74_v27 = vmul.f32 %v115_v24, %v63_v23 }
  0xbf   :  { %v69_v28 = vadd.f32 %v117_v26, %v115_v24  ;;  %v75_v29 = vmul.f32 %v117_v26, %v64_v25 }
  0xc1   :  { %70 = vadd.xlane.f32.xlu1 %v69_v28  ;;  %v76_v30 = vadd.f32 %v75_v29, %v74_v27 }
  0xc3   :  { %77 = vadd.xlane.f32.xlu0 %v76_v30 }
 0x146   :  { %v51_v31 = vpop.xlane.xlu1 %50 }
 0x147   :  { %118 = vlog2.f32 %v51_v31 }
 0x14a   :  { %v71_v32 = vpop.xlane.xlu1 %70 }
 0x14b   :  { %120 = vlog2.f32 %v71_v32 }
 0x14c   :  { %122 = vrcp.f32 %v71_v32  ;;  %v78_v38 = vpop.xlane.xlu0 %77 }
 0x154   :  { %v119_v33 = vpop.eup %118 }
 0x155   :  { %v53_v36 = vmul.f32 0.6931472, %v119_v33 }
 0x158   :  { %v121_v34 = vpop.eup %120 }
 0x159   :  { %v123_v35 = vpop.eup %122  ;;  %v73_v37 = vmul.f32 0.6931472, %v121_v34 }
 0x15a   :  { %v80_v40 = vmul.f32 %v123_v35, %v78_v38 }
 0x15b   :  { %v81_v39 = vsub.f32 %v53_v36, %v73_v37 }
 0x15d   :  { %v82_v41 = vadd.f32 %v81_v39, %v80_v40 }
 0x15f   :  { %v83_v42 = vrot.slane %v82_v41, 4 }
 0x161   :  { %v84_v43 = vadd.f32 %v83_v42, %v82_v41 }
 0x163   :  { %v85_v44 = vrot.slane %v84_v43, 2 }
 0x165   :  { %v86_v45 = vadd.f32 %v85_v44, %v84_v43 }
 0x167   :  { %v87_v46 = vrot.slane %v86_v45, 1 }
 0x169   :  { %v88_v47 = vadd.f32 %v87_v46, %v86_v45 }
 0x16b   :  { %90 = vst.msk [vmem:[#allocation7] sm:$0x1] %vm89_vm0, %v88_v47 }
 0x16c   :  { %175 = shalt.err (!%p172_p0)
}
 0x16d   :  { %100 = dma.vmem_to_hbm [thread:$0]  %s98_s1, 16, %s219_s2, [#allocation4]  }
 0x16e   :  { %188 = dma.done.wait [#allocation4], 16  }
 0x16f   :  { %189 = vsyncadd [#allocation4], 4294967280 }
 0x170   :  { %104 = vsyncpa [#allocation3], 1 }
 0x171   :  { %105 = vsyncpa [#allocation6], 1 }
 0x172   :  { %106 = vsyncpa [#allocation4], 1 }

</bundles_post_ra>
